<compile_context>
chip_gen: v7x
topology: tpu7x:2x2x1
jax: 0.10.0
libtpu: 0.0.40
codegen_flags: <defaults>
</compile_context>

<pallas_src>
import functools
import math

import jax
import jax.numpy as jnp
from jax import lax
from jax.experimental import pallas as pl
from jax.experimental.pallas import tpu as pltpu


def _ctx_attn_kernel(q_ref, k_ref, v_ref, o_ref, acc_ref, *,
                     hw_valid, scale, mm_dtype, approx_recip):
    # q_ref: (1, Cp, HWp)  k_ref: (1, tM, Cp)  v_ref: (1, tM, Dp)
    # o_ref: (1, Dp, HWp)  acc_ref: (Dp, HWp) f32 scratch (persists across m steps)
    m_step = pl.program_id(1)

    @pl.when(m_step == 0)
    def _():
        acc_ref[...] = jnp.zeros_like(acc_ref)

    q = q_ref[0]                  # (Cp, HWp): resident across m steps -> never rescaled
    k = k_ref[0] * scale          # (tM, Cp): 1/sqrt(C) folded into the small per-step tile

    # scores^T = K_scaled @ Q_flat -> (tM, HWp); MXU with f32 accumulation.
    scores_t = jnp.dot(k, q, preferred_element_type=jnp.float32)

    # Mask lane-padding columns so they do not pollute the softmax over HW.
    if hw_valid < scores_t.shape[-1]:
        col = lax.broadcasted_iota(jnp.int32, scores_t.shape, 1)
        scores_t = jnp.where(col < hw_valid, scores_t, jnp.float32(-1e30))

    # softmax over torch dim=1 (the HW axis) == last-axis (lane) reduce; f32 math.
    mx = jnp.max(scores_t, axis=-1, keepdims=True)          # (tM, 1)
    e = jnp.exp(scores_t - mx)                               # (tM, HWp) f32
    s = jnp.sum(e, axis=-1, keepdims=True)                   # (tM, 1)
    if approx_recip:
        inv_s = pl.reciprocal(s, approx=True)                # EUP slot, ~free
    else:
        inv_s = 1.0 / s

    # Fold the softmax denominator into V: a (tM, Dp) pass instead of a (tM, HWp) one.
    # The (tM, 1) factor broadcasts along lanes with no relayout in this orientation.
    v_scaled = (v_ref[0] * inv_s).astype(mm_dtype)           # (tM, Dp)
    e_mm = e.astype(mm_dtype)                                # no-op on the f32 path

    # out^T += V_scaled^T @ E : contract the tM axis of both operands.  The only
    # non-canonical operand is the tiny (tM, Dp) tile; keeping V as (M, D) avoids an
    # illegal lane-dim block that a pre-transposed (Dp, tM) tile would need for tM<128.
    acc_ref[...] += lax.dot_general(
        v_scaled, e_mm,
        dimension_numbers=(((0,), (0,)), ((), ())),
        preferred_element_type=jnp.float32,
    )

    @pl.when(m_step == pl.num_programs(1) - 1)
    def _():
        o_ref[0] = acc_ref[...].astype(o_ref.dtype)


def _round_up(x, m):
    return ((x + m - 1) // m) * m


def _vmem_capacity_bytes():
    """Physical VMEM per core; conservative 64 MiB (v7x) fallback."""
    try:
        info = pltpu.get_tpu_info()
        cap = getattr(info, "vmem_capacity_bytes", None)
        if cap:
            return int(cap)
    except Exception:
        pass
    return 64 * 1024 * 1024


def _tile_vmem_bytes(tm, hwp, cp, dp, in_bytes):
    q_blk = 2 * cp * hwp * in_bytes      # Q block, double-buffered
    k_blk = 2 * tm * cp * in_bytes       # K tile
    v_blk = 2 * tm * dp * in_bytes       # V tile
    o_blk = 2 * dp * hwp * in_bytes      # output block
    acc = dp * hwp * 4                   # f32 accumulator scratch
    inter = 3 * tm * hwp * 4             # f32 scores / exp / slack
    return q_blk + k_blk + v_blk + o_blk + acc + inter


def _pick_tile_m(m_pad, hwp, cp, dp, in_bytes, budget):
    cands = [c for c in (1024, 512, 256, 128, 64, 32, 16, 8) if c <= m_pad] or [m_pad]
    for c in cands:
        if _tile_vmem_bytes(c, hwp, cp, dp, in_bytes) <= budget:
            return c
    # TODO(synk): HW-tiling (two-pass softmax) when even the smallest M tile overflows VMEM.
    return cands[-1]


def context_attention(Q, K, V, *, tile_m=None, matmul_dtype=None, approx_recip=True):
    B, C, H, W = Q.shape
    Bk, M, Ck = K.shape
    Bv, Mv, D = V.shape
    assert Bk == B and Bv == B and Ck == C and Mv == M
    HW = H * W
    out_dtype = Q.dtype

    # torch divides by sqrt(K.size(-1)) == sqrt(C) -- use the *original* C.
    scale = 1.0 / math.sqrt(C)

    mm_dtype = jnp.dtype(matmul_dtype) if matmul_dtype is not None else jnp.dtype(Q.dtype)
    in_bytes = mm_dtype.itemsize
    sub = {4: 8, 2: 16, 1: 32}.get(in_bytes, 8)     # sublane multiple per dtype

    # ---- alignment padding (wrapper-side layout plumbing) ----
    HWp = _round_up(HW, 128)        # lane-dense, unmasked output stores
    Cp = _round_up(C, sub)
    Dp = _round_up(D, sub)

    # ---- VMEM-aware tile-M selection + chip-aware vmem limit ----
    vmem_cap = _vmem_capacity_bytes()
    vmem_limit = max(32 * 1024 * 1024, min((vmem_cap * 3) // 4, 100 * 1024 * 1024))
    if tile_m is None:
        tM = _pick_tile_m(_round_up(M, sub), HWp, Cp, Dp, in_bytes,
                          int(vmem_limit * 0.9))
    else:
        tM = _round_up(max(int(tile_m), sub), sub)
    Mp = _round_up(M, tM)
    n_m = Mp // tM

    # ---- pad operands (zero padding is exact: padded C contributes 0 to scores,
    #      padded M rows of K/V contribute 0 to the output, padded HW is masked) ----
    q_flat = Q.reshape(B, C, HW).astype(mm_dtype)
    if (Cp, HWp) != (C, HW):
        q_flat = jnp.pad(q_flat, ((0, 0), (0, Cp - C), (0, HWp - HW)))
    Kp = K.astype(mm_dtype)
    if (Mp, Cp) != (M, C):
        Kp = jnp.pad(Kp, ((0, 0), (0, Mp - M), (0, Cp - C)))
    Vp = V.astype(mm_dtype)
    if (Mp, Dp) != (M, D):
        Vp = jnp.pad(Vp, ((0, 0), (0, Mp - M), (0, Dp - D)))

    kernel = functools.partial(
        _ctx_attn_kernel,
        hw_valid=HW, scale=scale, mm_dtype=mm_dtype, approx_recip=approx_recip)

    # Note: Q / out blocks only change on the slow b axis; on v7x they could be
    # single-buffered (pipeline_mode=pl.Buffered(1)) to save VMEM — left at the
    # default double-buffering for portability.
    out_flat = pl.pallas_call(
        kernel,
        out_shape=jax.ShapeDtypeStruct((B, Dp, HWp), out_dtype),
        grid_spec=pltpu.PrefetchScalarGridSpec(
            num_scalar_prefetch=0,
            grid=(B, n_m),
            in_specs=[
                pl.BlockSpec((1, Cp, HWp), lambda b, m: (b, 0, 0)),   # Q: resident per b
                pl.BlockSpec((1, tM, Cp), lambda b, m: (b, m, 0)),    # K tile
                pl.BlockSpec((1, tM, Dp), lambda b, m: (b, m, 0)),    # V tile
            ],
            out_specs=pl.BlockSpec((1, Dp, HWp), lambda b, m: (b, 0, 0)),
            scratch_shapes=[pltpu.VMEM((Dp, HWp), jnp.float32)],
        ),
        compiler_params=pltpu.CompilerParams(
            dimension_semantics=("parallel", "arbitrary"),
            vmem_limit_bytes=int(vmem_limit),
        ),
    )(q_flat, Kp, Vp)

    return out_flat[:, :D, :HW].reshape(B, D, H, W)


def _reference(Q, K, V):
    B, C, H, W = Q.shape
    qf = Q.reshape(B, C, H * W).transpose(0, 2, 1)                  # (B, HW, C)
    scores = jnp.einsum("bqc,bmc->bqm", qf, K) / jnp.sqrt(jnp.float32(C))
    w = jax.nn.softmax(scores, axis=1)                              # softmax over HW axis
    out = jnp.einsum("bqm,bmd->bqd", w, V).transpose(0, 2, 1)
    return out.reshape(B, -1, H, W)


if __name__ == "__main__":
    key = jax.random.PRNGKey(0)
    kq, kk, kv = jax.random.split(key, 3)

    # Test 1: lane-aligned HW (16*16=256); C/D padded to sublane multiples in-wrapper.
    B, C, H, W, M, D = 2, 4, 16, 16, 8, 4
    Q = jax.random.normal(kq, (B, C, H, W), dtype=jnp.float32)
    K = jax.random.normal(kk, (B, M, C), dtype=jnp.float32)
    V = jax.random.normal(kv, (B, M, D), dtype=jnp.float32)
    out = context_attention(Q, K, V)
    jax.block_until_ready(out)
    ref = _reference(Q, K, V)
    assert out.shape == (B, D, H, W), out.shape
    assert jnp.allclose(out, ref, atol=1e-3, rtol=1e-3), "mismatch vs reference"

    # Test 2: tiled-M accumulator path (n_m > 1).
    M2 = 16
    kk2, kv2 = jax.random.split(jax.random.PRNGKey(1))
    K2 = jax.random.normal(kk2, (B, M2, C), dtype=jnp.float32)
    V2 = jax.random.normal(kv2, (B, M2, D), dtype=jnp.float32)
    out2 = context_attention(Q, K2, V2, tile_m=8)
    jax.block_until_ready(out2)
    ref2 = _reference(Q, K2, V2)
    assert jnp.allclose(out2, ref2, atol=1e-3, rtol=1e-3), "mismatch (tiled M)"

    # Test 3: non-lane-aligned HW (padded + masked softmax), ragged M and D.
    kq3, kk3, kv3 = jax.random.split(jax.random.PRNGKey(2), 3)
    B3, C3, H3, W3, M3, D3 = 1, 4, 10, 10, 5, 3
    Q3 = jax.random.normal(kq3, (B3, C3, H3, W3), dtype=jnp.float32)
    K3 = jax.random.normal(kk3, (B3, M3, C3), dtype=jnp.float32)
    V3 = jax.random.normal(kv3, (B3, M3, D3), dtype=jnp.float32)
    out3 = context_attention(Q3, K3, V3)
    jax.block_until_ready(out3)
    ref3 = _reference(Q3, K3, V3)
    assert out3.shape == (B3, D3, H3, W3), out3.shape
    assert jnp.allclose(out3, ref3, atol=1e-3, rtol=1e-3), "mismatch (padded HW/M/D)"

    # Test 4: bf16 MXU fast path for f32 callers (softmax statistics stay f32).
    out4 = context_attention(Q, K, V, matmul_dtype=jnp.bfloat16)
    jax.block_until_ready(out4)
    assert jnp.allclose(out4, ref, atol=2e-2, rtol=2e-2), "mismatch (bf16 matmul path)"

    print("KERNEL_OK")
</pallas_src>

<mosaic_0001>
module attributes {stable_mosaic.version = 11 : i64} {
  func.func @_ctx_attn_kernel(%arg0: i32, %arg1: i32, %arg2: memref<1x8x256xf32, #tpu.memory_space<vmem>>, %arg3: memref<1x8x8xf32, #tpu.memory_space<vmem>>, %arg4: memref<1x8x8xf32, #tpu.memory_space<vmem>>, %arg5: memref<1x8x256xf32, #tpu.memory_space<vmem>>, %arg6: memref<8x256xf32, #tpu.memory_space<vmem>>) attributes {dimension_semantics = [#tpu.dimension_semantics<parallel>, #tpu.dimension_semantics<arbitrary>], iteration_bounds = array<i64: 2, 1>, scalar_prefetch = 0 : i64, scratch_operands = 1 : i64, tpu.core_type = #tpu.core_type<tc>, window_params = [{transform_indices = @transform_0, window_bounds = array<i64: 1, 8, 256>}, {transform_indices = @transform_1, window_bounds = array<i64: 1, 8, 8>}, {transform_indices = @transform_2, window_bounds = array<i64: 1, 8, 8>}, {transform_indices = @transform_3, window_bounds = array<i64: 1, 8, 256>}]} {
    %c0_i32 = arith.constant 0 : i32
    %0 = arith.cmpi eq, %arg1, %c0_i32 : i32
    %1 = arith.extui %0 : i1 to i32
    %c0_i32_0 = arith.constant 0 : i32
    %2 = arith.cmpi ne, %1, %c0_i32_0 : i32
    scf.if %2 {
      %cst_19 = arith.constant 0.000000e+00 : f32
      %29 = vector.broadcast %cst_19 : f32 to vector<8x256xf32>
      %c0_20 = arith.constant 0 : index
      %c0_21 = arith.constant 0 : index
      %30 = vector.load %arg6[%c0_20, %c0_21] : memref<8x256xf32, #tpu.memory_space<vmem>>, vector<8x256xf32>
      tpu.vector_store %arg6[%c0_20, %c0_21], %29 {strides = array<i32>} : memref<8x256xf32, #tpu.memory_space<vmem>>, vector<8x256xf32>,
    } else {
    }
    %c0 = arith.constant 0 : index
    %c0_1 = arith.constant 0 : index
    %c0_2 = arith.constant 0 : index
    %3 = vector.load %arg2[%c0, %c0_1, %c0_2] : memref<1x8x256xf32, #tpu.memory_space<vmem>>, vector<1x8x256xf32>
    %4 = vector.shape_cast %3 : vector<1x8x256xf32> to vector<8x256xf32>
    %c0_3 = arith.constant 0 : index
    %c0_4 = arith.constant 0 : index
    %c0_5 = arith.constant 0 : index
    %5 = vector.load %arg3[%c0_3, %c0_4, %c0_5] : memref<1x8x8xf32, #tpu.memory_space<vmem>>, vector<1x8x8xf32>
    %6 = vector.shape_cast %5 : vector<1x8x8xf32> to vector<8x8xf32>
    %cst = arith.constant 5.000000e-01 : f32
    %7 = vector.broadcast %cst : f32 to vector<8x8xf32>
    %8 = arith.mulf %6, %7 : vector<8x8xf32>
    %cst_6 = arith.constant dense<0.000000e+00> : vector<8x256xf32>
    %9 = tpu.matmul %8, %4, %cst_6 {dimension_numbers = #tpu.dot_dimension_numbers<[1], [0], [0], [1], [0, 0, 1, 1], [], []>} : vector<8x8xf32>, vector<8x256xf32>, vector<8x256xf32> -> vector<8x256xf32>
    %cst_7 = arith.constant dense<0xFF800000> : vector<8xf32>
    %10 = vector.multi_reduction <maximumf>, %9, %cst_7 [1] : vector<8x256xf32> to vector<8xf32>
    %11 = vector.shape_cast %10 : vector<8xf32> to vector<8x1xf32>
    %12 = vector.broadcast %11 : vector<8x1xf32> to vector<8x256xf32>
    %13 = arith.subf %9, %12 : vector<8x256xf32>
    %14 = math.exp %13 : vector<8x256xf32>
    %cst_8 = arith.constant dense<0.000000e+00> : vector<8xf32>
    %15 = vector.multi_reduction <add>, %14, %cst_8 [1] : vector<8x256xf32> to vector<8xf32>
    %16 = vector.shape_cast %15 : vector<8xf32> to vector<8x1xf32>
    %17 = tpu.reciprocal %16 {approx = true} : vector<8x1xf32> -> vector<8x1xf32>
    %c0_9 = arith.constant 0 : index
    %c0_10 = arith.constant 0 : index
    %c0_11 = arith.constant 0 : index
    %18 = vector.load %arg4[%c0_9, %c0_10, %c0_11] : memref<1x8x8xf32, #tpu.memory_space<vmem>>, vector<1x8x8xf32>
    %19 = vector.shape_cast %18 : vector<1x8x8xf32> to vector<8x8xf32>
    %20 = vector.broadcast %17 : vector<8x1xf32> to vector<8x8xf32>
    %21 = arith.mulf %19, %20 : vector<8x8xf32>
    %c0_12 = arith.constant 0 : index
    %c0_13 = arith.constant 0 : index
    %22 = vector.load %arg6[%c0_12, %c0_13] : memref<8x256xf32, #tpu.memory_space<vmem>>, vector<8x256xf32>
    %cst_14 = arith.constant dense<0.000000e+00> : vector<8x256xf32>
    %23 = tpu.matmul %21, %14, %cst_14 {dimension_numbers = #tpu.dot_dimension_numbers<[0], [0], [1], [1], [0, 1, 1, 1], [], []>} : vector<8x8xf32>, vector<8x256xf32>, vector<8x256xf32> -> vector<8x256xf32>
    %24 = arith.addf %22, %23 : vector<8x256xf32>
    %c0_15 = arith.constant 0 : index
    %c0_16 = arith.constant 0 : index
    %25 = vector.load %arg6[%c0_15, %c0_16] : memref<8x256xf32, #tpu.memory_space<vmem>>, vector<8x256xf32>
    tpu.vector_store %arg6[%c0_15, %c0_16], %24 {strides = array<i32>} : memref<8x256xf32, #tpu.memory_space<vmem>>, vector<8x256xf32>,
    %c0_i32_17 = arith.constant 0 : i32
    %26 = arith.cmpi eq, %arg1, %c0_i32_17 : i32
    %27 = arith.extui %26 : i1 to i32
    %c0_i32_18 = arith.constant 0 : i32
    %28 = arith.cmpi ne, %27, %c0_i32_18 : i32
    scf.if %28 {
      %c0_19 = arith.constant 0 : index
      %c0_20 = arith.constant 0 : index
      %29 = vector.load %arg6[%c0_19, %c0_20] : memref<8x256xf32, #tpu.memory_space<vmem>>, vector<8x256xf32>
      %c0_21 = arith.constant 0 : index
      %c0_22 = arith.constant 0 : index
      %c0_23 = arith.constant 0 : index
      %30 = vector.load %arg5[%c0_21, %c0_22, %c0_23] : memref<1x8x256xf32, #tpu.memory_space<vmem>>, vector<1x8x256xf32>
      %31 = vector.shape_cast %30 : vector<1x8x256xf32> to vector<8x256xf32>
      %32 = vector.shape_cast %29 : vector<8x256xf32> to vector<1x8x256xf32>
      tpu.vector_store %arg5[%c0_21, %c0_22, %c0_23], %32 {strides = array<i32>} : memref<1x8x256xf32, #tpu.memory_space<vmem>>, vector<1x8x256xf32>,
    } else {
    }
    return
  }
  func.func @transform_0(%arg0: i32, %arg1: i32) -> (i32, i32, i32) {
    %c0_i32 = arith.constant 0 : i32
    %c0_i32_0 = arith.constant 0 : i32
    %c0_i32_1 = arith.constant 0 : i32
    return %arg0, %c0_i32, %c0_i32_0 : i32, i32, i32
  }
  func.func @transform_1(%arg0: i32, %arg1: i32) -> (i32, i32, i32) {
    %c0_i32 = arith.constant 0 : i32
    %c0_i32_0 = arith.constant 0 : i32
    return %arg0, %arg1, %c0_i32 : i32, i32, i32
  }
  func.func @transform_2(%arg0: i32, %arg1: i32) -> (i32, i32, i32) {
    %c0_i32 = arith.constant 0 : i32
    %c0_i32_0 = arith.constant 0 : i32
    return %arg0, %arg1, %c0_i32 : i32, i32, i32
  }
  func.func @transform_3(%arg0: i32, %arg1: i32) -> (i32, i32, i32) {
    %c0_i32 = arith.constant 0 : i32
    %c0_i32_0 = arith.constant 0 : i32
    %c0_i32_1 = arith.constant 0 : i32
    return %arg0, %c0_i32, %c0_i32_0 : i32, i32, i32
  }
}

</mosaic_0001>

<bundles_post_ra>
// kernel: tpu_custom_call.1
= control target key start
LH: loop header
LB: loop body
LE: loop exit
PB: predicated region body
PF: predicated region fallthrough
CT: control target
= control target key end

     0   :  { %s1207_s0 = inlined_call_operand.hbm [shape: f32[2,8,256], index: 0, kind: input, shape index: {}]   ;;  %s1208_s1 = inlined_call_operand.hbm [shape: f32[2,8,8], index: 1, kind: input, shape index: {}]   ;;  %s1209_s2 = inlined_call_operand.hbm [shape: f32[2,8,8], index: 2, kind: input, shape index: {}]   ;;  %s1210_s3 = inlined_call_operand.hbm [shape: f32[2,8,256], index: 3, kind: output, shape index: {}]  }
   0x1   :  { %1216 = sst [smem:[#allocation16_spill]] %s1208_s1 }
   0x2   :  { %8 = vsyncpa [#allocation4], 0 }
   0x3   :  { %10 = vsyncpa [#allocation4 + $0x1], 0 }
   0x4   :  { %11 = vsyncpa [#allocation7], 0 }
   0x5   :  { %13 = vsyncpa [#allocation7 + $0x1], 0 }
   0x6   :  { %14 = vsyncpa [#allocation5], 0 }
   0x7   :  { %16 = vsyncpa [#allocation5 + $0x1], 0  ;;  %s940_s12 = smov 0   ;;  %s942_s13 = smov 0  }
   0x8   :  { %s944_s14 = smov 0   ;;  %s946_s15 = smov 0  }
   0x9   :  { %s948_s16 = smov 0   ;;  %s950_s17 = smov 0  }
   0xa LB: > { %1217 = sst [smem:[#allocation13_spill]] %s909_s16  ;;  %s971_s18 = sadd.s32 4294967295, %s913_s17   ;;  %s913_s17 = sphi %s950_s17, %s22_s17   ;;  %s909_s16 = sphi %s948_s16, %s1236_s16   ;;  %s905_s15 = sphi %s946_s15, %s1235_s15   ;;  %s901_s14 = sphi %s944_s14, %s1239_s14   ;;  %s897_s13 = sphi %s942_s13, %s1238_s13   ;;  %s893_s12 = sphi %s940_s12, %s1237_s12  }
   0xb   : > { %s634_s19 = sadd.s32 4294967294, %s913_s17   ;;  %s34_s20 = sadd.s32 1, %s909_s16 }
   0xc   : > { %s41_s21 = sadd.s32 1, %s901_s14  ;;  %p36_p0 = scmp.ge.s32.totalorder %s34_s20, 2 }
   0xd   : > { %p48_p1 = scmp.ne.s32.totalorder %s901_s14, %s897_s13  ;;  %p49_p2 = scmp.eq.s32.totalorder %s913_s17, 0 }
   0xe   : > { %p54_p3 = scmp.ne.s32.totalorder %s897_s13, %s893_s12  ;;  %s1241_s20 = smov (%p36_p0, %s34_s20), 0 }
   0xf   : > { %1218 = sst [smem:[#allocation14_spill]] %s1241_s20  ;;  %p983_p4 = por %p49_p2, %p48_p1 }
  0x10   : > { %p55_p5 = scmp.eq.s32.totalorder %s971_s18, 0  ;;  %s38_s23 = ssub.s32 %s909_s16, %s1241_s20 }
  0x11   : > { %p134_p6 = scmp.eq.s32.totalorder %s971_s18, 1  ;;  %p39_p7 = scmp.eq.s32.totalorder %s38_s23, 0 }
  0x12   : > { %p991_p8 = por %p55_p5, %p54_p3  ;;  %p140_p10 = scmp.eq.s32.totalorder %s634_s19, 1 }
  0x13   : > { %p995_p9 = por %p134_p6, %p48_p1  ;;  %p680_p13 = scmp.lt.s32.totalorder %s913_s17, 2 }
  0x14   : > { %s1220_s24 = scalar_select %p991_p8, 1, 0 }
  0x15   : > { %s1221_s25 = scalar_select %p995_p9, 1, 0 }
  0x16   : > { %s1000_s26 = scalar_select %p39_p7, %s901_s14, %s41_s21  }
  0x17   : > { %p1002_p11 = por %p140_p10, %p54_p3  ;;  %s1009_s28 = sand.u32 1, %s901_s14  }
  0x18   : > { %1222 = sst [smem:[#allocation15_spill]] %s1000_s26  ;;  %s179_s29 = sand.u32 1, %s913_s17  }
  0x19   : > { %s1223_s27 = scalar_select %p1002_p11, 1, 0 }
  0x1a   : > { %s1211_s30 = sshll.u32 %s1009_s28, 3  ;;  %p1015_p0 = pnand %p680_p13, %p983_p4 }
  0x1b   : > { %s641_s5 = sshll.u32 %s909_s16, 7  ;;  %s1225_s1 = sld [smem:[#allocation16_spill]] }
  0x1c   : > { %s183_s9 = scalar_lea.vmem [#allocation6], %s1211_s30  ;;  %s1032_s21 = scalar_lea.hbm %s1209_s2, %s641_s5 }
  0x1d   : > { %s191_s10 = sshll.u32 %s183_s9, 4  ;;  %s1034_s22 = scalar_lea.sflag [#allocation7], %s179_s29  ;;  %s1027_s10 = int_to_ptr.vmem [resolvable:$true] %s191_s10 }
  0x1e   : > { %p1040_p2 = pneg %p1015_p0 }
  0x21   : > { %s1023_s8 = scalar_lea.hbm %s1225_s1, %s641_s5  ;;  %s742_s30 = scalar_lea.hbm %s1225_s1, 256 }
  0x22   : > { %s737_s23 = scalar_lea.hbm %s1023_s8, 128  ;;  %p743_p5 = scmp.lt.u32.totalorder %s1023_s8, %s1225_s1 }
  0x23   : > { %p738_p1 = scmp.ne.s32.totalorder %s1023_s8, %s737_s23  ;;  %p744_p6 = scmp.lt.u32.totalorder %s742_s30, %s737_s23 }
  0x24   : > { %p746_p10 = scmp.lt.u32.totalorder %s737_s23, %s1023_s8 }
  0x25   : > { %p740_p3 = pnand %p1040_p2, %p738_p1  ;;  %p745_p7 = por %p744_p6, %p743_p5 }
  0x27   : > { %p741_p4 = pneg %p740_p3  ;;  %p747_p13 = por %p746_p10, %p745_p7 }
  0x29   : > { %p748_p12 = pnand %p747_p13, %p741_p4 }
  0x2b   : > { %751 = shalt.err (!%p748_p12)
}
  0x2c   : > { %s752_s29 = scalar_lea.vmem %s1027_s10, 128  ;;  %s915_s19 = smov [#allocation6]  }
  0x2d   : > { %p753_p1 = scmp.ne.s32.totalorder %s1027_s10, %s752_s29  ;;  %s757_s7 = sshll.u32 %s915_s19, 4  ;;  %s758_s7 = int_to_ptr.vmem [resolvable:$false] %s757_s7 }
  0x2e   : > { %s759_s9 = scalar_lea.vmem %s758_s7, 256  ;;  %p760_p9 = scmp.lt.s32.totalorder %s1027_s10, %s758_s7 }
  0x2f   : > { %p755_p3 = pnand %p753_p1, %p1040_p2  ;;  %p761_p8 = scmp.lt.s32.totalorder %s759_s9, %s752_s29 }
  0x31   : > { %p756_p11 = pneg %p755_p3  ;;  %p762_p5 = por %p761_p8, %p760_p9 }
  0x33   : > { %p763_p6 = pnand %p762_p5, %p756_p11 }
  0x35   : > { %766 = shalt.err (!%p763_p6)
}
  0x36   : > { %672 = dma.hbm_to_vmem [thread:$0]  (!%p1015_p0), %s1023_s8, 128, %s1027_s10, %s1034_s22  }
  0x37   : > { %p644_p12 = scmp.ge.s32.totalorder %s913_s17, 1  ;;  %p215_p4 = scmp.lt.s32.totalorder %s913_s17, 3 }
  0x38   : > { %s637_s23 = sshll.u32 %s1009_s28, 4  ;;  %s656_s11 = sshll.u32 %s909_s16, 8 }
  0x39   : > { %p1066_p7 = pnand %p644_p12, %p215_p4  ;;  %s1075_s19 = scalar_lea.hbm %s1207_s0, %s656_s11 }
  0x3a   : > { %s164_s7 = scalar_lea.vmem [#allocation3], %s637_s23  ;;  %s1228_s10 = sshll.u32 %s1009_s28, 3 }
  0x3b   : > { %s1227_s30 = scalar_select %p1066_p7, 1, 0 }
  0x3c   : > { %s172_s8 = sshll.u32 %s164_s7, 4  ;;  %s202_s9 = scalar_lea.vmem [#allocation8], %s1228_s10  ;;  %s1079_s8 = int_to_ptr.vmem [resolvable:$true] %s172_s8 }
  0x3d   : > { %s210_s1 = sshll.u32 %s202_s9, 4  ;;  %s161_s20 = scalar_lea.sflag [#allocation4], %s1009_s28  ;;  %s1081_s1 = int_to_ptr.vmem [resolvable:$true] %s210_s1 }
  0x3e   : > { %s767_s16 = scalar_lea.hbm %s1075_s19, 256  ;;  %s772_s29 = scalar_lea.hbm %s1207_s0, 512 }
  0x3f   : > { %p768_p8 = scmp.ne.s32.totalorder %s1075_s19, %s767_s16  ;;  %p773_p10 = scmp.lt.u32.totalorder %s1075_s19, %s1207_s0 }
  0x40   : > { %p774_p13 = scmp.lt.u32.totalorder %s772_s29, %s767_s16  ;;  %p776_p3 = scmp.lt.u32.totalorder %s767_s16, %s1075_s19 }
  0x41   : > { %p770_p9 = pnand %p768_p8, %p1040_p2 }
  0x42   : > { %p775_p1 = por %p774_p13, %p773_p10 }
  0x43   : > { %p771_p11 = pneg %p770_p9 }
  0x44   : > { %p777_p5 = por %p776_p3, %p775_p1 }
  0x46   : > { %p778_p6 = pnand %p777_p5, %p771_p11 }
  0x48   : > { %781 = shalt.err (!%p778_p6)
}
  0x49   : > { %s782_s28 = scalar_lea.vmem %s1079_s8, 256  ;;  %s916_s7 = smov [#allocation3]  }
  0x4a   : > { %p783_p12 = scmp.ne.s32.totalorder %s1079_s8, %s782_s28  ;;  %s787_s10 = sshll.u32 %s916_s7, 4  ;;  %s788_s10 = int_to_ptr.vmem [resolvable:$false] %s787_s10 }
  0x4b   : > { %s789_s26 = scalar_lea.vmem %s788_s10, 512  ;;  %p790_p9 = scmp.lt.s32.totalorder %s1079_s8, %s788_s10 }
  0x4c   : > { %p785_p4 = pnand %p783_p12, %p1040_p2  ;;  %p791_p7 = scmp.lt.s32.totalorder %s789_s26, %s782_s28 }
  0x4e   : > { %p786_p8 = pneg %p785_p4  ;;  %p792_p10 = por %p791_p7, %p790_p9 }
  0x50   : > { %p793_p13 = pnand %p792_p10, %p786_p8 }
  0x52   : > { %796 = shalt.err (!%p793_p13)
}
  0x53   : > { %669 = dma.hbm_to_vmem [thread:$0]  (!%p1015_p0), %s1075_s19, 256, %s1079_s8, %s161_s20  }
  0x54   : > { %s797_s16 = scalar_lea.hbm %s1032_s21, 128  ;;  %s802_s5 = scalar_lea.hbm %s1209_s2, 256 }
  0x55   : > { %p798_p11 = scmp.ne.s32.totalorder %s1032_s21, %s797_s16  ;;  %p803_p7 = scmp.lt.u32.totalorder %s1032_s21, %s1209_s2 }
  0x56   : > { %p804_p5 = scmp.lt.u32.totalorder %s802_s5, %s797_s16  ;;  %p806_p12 = scmp.lt.u32.totalorder %s797_s16, %s1032_s21 }
  0x57   : > { %p800_p1 = pnand %p798_p11, %p1040_p2 }
  0x58   : > { %p805_p6 = por %p804_p5, %p803_p7 }
  0x59   : > { %p801_p3 = pneg %p800_p1 }
  0x5a   : > { %p807_p4 = por %p806_p12, %p805_p6 }
  0x5c   : > { %p808_p8 = pnand %p807_p4, %p801_p3 }
  0x5e   : > { %811 = shalt.err (!%p808_p8)
}
  0x5f   : > { %s812_s20 = scalar_lea.vmem %s1081_s1, 128  ;;  %s917_s19 = smov [#allocation8]  }
  0x60   : > { %p813_p9 = scmp.ne.s32.totalorder %s1081_s1, %s812_s20  ;;  %s817_s8 = sshll.u32 %s917_s19, 4  ;;  %s818_s8 = int_to_ptr.vmem [resolvable:$false] %s817_s8 }
  0x61   : > { %s819_s28 = scalar_lea.vmem %s818_s8, 256  ;;  %p820_p11 = scmp.lt.s32.totalorder %s1081_s1, %s818_s8 }
  0x62   : > { %p815_p10 = pnand %p813_p9, %p1040_p2  ;;  %p821_p1 = scmp.lt.s32.totalorder %s819_s28, %s812_s20 }
  0x64   : > { %p816_p13 = pneg %p815_p10  ;;  %p822_p7 = por %p821_p1, %p820_p11 }
  0x66   : > { %p823_p5 = pnand %p822_p7, %p816_p13 }
  0x68   : > { %826 = shalt.err (!%p823_p5)
}
  0x69   : > { %675 = dma.hbm_to_vmem [thread:$0]  (!%p1015_p0), %s1032_s21, 128, %s1081_s1, %s1034_s22  }
  0x6a   : > { %p1229_p3 = scmp.ne.s32.totalorder %s1227_s30, 0 }
  0x6b   : > { %s1130_s6 = sand.u32 (!%p1229_p3), 1, %s897_s13   ;;  %p1230_p2 = scmp.ne.s32.totalorder (!%p1229_p3), %s1220_s24, 0 }
  0x6c   : > { %219 = sbr.rel (%p1229_p3) target bundleno = 1009 (0x3f1), region = 32  ;;  %s645_s7 = sshll.u32 (!%p1229_p3), %s1130_s6, 4 }
  0x6d   : > { %s222_s10 = scalar_lea.sflag (!%p1229_p3), [#allocation4], %s1130_s6  ;;  %s225_s26 = scalar_lea.vmem (!%p1229_p3), [#allocation3], %s645_s7 }
  0x73   : > { %880 = dma.done.wait (%p1230_p2), %s222_s10, 256  }
  0x74   : > { %882 = vsyncadd (%p1230_p2), %s222_s10, 4294967040  ;;  %s230_s1 = sand.u32 1, %s971_s18   ;;  %s646_s4 = sshll.u32 %s1130_s6, 3 }
  0x75   : > { %s231_s21 = scalar_lea.sflag [#allocation7], %s230_s1  ;;  %s234_s22 = scalar_lea.vmem [#allocation6], %s646_s4 }
  0x76   : > { %884 = dma.done.wait (%p1230_p2), %s231_s21, 256  }
  0x77   : > { %886 = vsyncadd (%p1230_p2), %s231_s21, 4294967040  ;;  %v918_v0 = vmov 0.0   ;;  %v283_v1 = vld [vmem:[%s225_s26 + $0x8] sm:$0xff]  ;;  %v282_v2 = vld [vmem:[%s225_s26] sm:$0xff]  ;;  %vm286_vm0 = vcmask 64512   ;;  %s243_s18 = scalar_lea.vmem [#allocation8], %s646_s4 }
  0x78   : > { %354 = vmatprep.mubr.f32.mxu0 %v918_v0  ;;  %477 = vmatprep.mubr.f32.mxu1 %v918_v0  ;;  %v284_v3 = vld [vmem:[%s234_s22] sm:$0xff]  ;;  %v374_v17 = vld [vmem:[%s243_s18] sm:$0xff]  ;;  %s275_s24 = scalar_lea.vmem [#allocation9], %s645_s7  ;;  %s657_s16 = sshll.u32 %s905_s15, 8 }
  0x79   : > { %290 = vmatprep.subr.mxu0 %v283_v1  ;;  %v285_v4 = vmul.f32 0.5, %v284_v3  ;;  %s510_s30 = sshll.u32 %s275_s24, 4  ;;  %s1160_s5 = scalar_lea.hbm %s1210_s3, %s657_s16  ;;  %s1155_s30 = int_to_ptr.vmem [resolvable:$true] %s510_s30 }
  0x7a   : > { %291 = vmatpush1.msra.mxu0 %v282_v2  ;;  %s496_s29 = scalar_lea.sflag [#allocation5], %s1130_s6  ;;  %s827_s23 = scalar_lea.vmem %s1155_s30, 256 }
  0x7b   : > { %649 = vmatmul.mubr.msk.f32.vlgmr.msra.gmra.mrb[0].mxu0 %vm286_vm0, %v285_v4  ;;  %p828_p0 = scmp.ne.s32.totalorder %s1155_s30, %s827_s23  ;;  %p1231_p6 = scmp.ne.s32.totalorder %s1221_s25, 0 }
  0x7c   : > { %s919_s15 = smov [#allocation9]  }
  0x7d   : > { %p829_p12 = pnand %p828_p0, %p1231_p6  ;;  %s831_s20 = sshll.u32 %s919_s15, 4  ;;  %s832_s20 = int_to_ptr.vmem [resolvable:$false] %s831_s20 }
  0x7e   : > { %s833_s19 = scalar_lea.vmem %s832_s20, 512  ;;  %p834_p8 = scmp.lt.s32.totalorder %s1155_s30, %s832_s20 }
  0x7f   : > { %p830_p4 = pneg %p829_p12  ;;  %p835_p9 = scmp.lt.s32.totalorder %s833_s19, %s827_s23 }
  0x81   : > { %p836_p10 = por %p835_p9, %p834_p8 }
  0x83   : > { %p837_p13 = pnand %p836_p10, %p830_p4 }
 0x14e   : > { %v356_v5 = vpop.f32.mrb[0].mxu0 }
 0x14f   : > { %v358_v6 = vpop.f32.mrb[1].mxu0 }
 0x150   : > { %v361_v7 = vmax.f32 %v356_v5, %v358_v6 }
 0x152   : > { %362 = vmax.xlane.f32.xlu0 %v361_v7 }
 0x1df   : > { %v363_v8 = vpop.xlane.xlu0 %362 }
 0x1e0   : > { %v364_v9 = vsub.f32 %v356_v5, %v363_v8  ;;  %v365_v10 = vsub.f32 %v358_v6, %v363_v8 }
 0x1e2   : > { %v366_v11 = vmul.f32 1.442695, %v364_v9  ;;  %v368_v12 = vmul.f32 1.442695, %v365_v10 }
 0x1e4   : > { %731 = vpow2.f32 %v366_v11 }
 0x1e5   : > { %733 = vpow2.f32 %v368_v12 }
 0x1ee   : > { %v732_v13 = vpop.eup %731 }
 0x1ef   : > { %v734_v14 = vpop.eup %733 }
 0x1f0   : > { %413 = vmatprep.subr.mxu1 %v734_v14  ;;  %v370_v15 = vadd.f32 %v734_v14, %v732_v13 }
 0x1f1   : > { %414 = vmatpush1.msra.mxu1 %v732_v13 }
 0x1f2   : > { %371 = vadd.xlane.f32.xlu0 %v370_v15 }
 0x27f   : > { %v372_v16 = vpop.xlane.xlu0 %371 }
 0x280   : > { %735 = vrcp.f32 %v372_v16 }
 0x28a   : > { %v736_v18 = vpop.eup %735 }
 0x28b   : > { %v375_v19 = vmul.f32 %v736_v18, %v374_v17 }
 0x28d   : > { %378 = vxpose.xlu1.b32.start.end [1/1] (short) (narrow) %v375_v19, 8 }
 0x30d   : > { %v394_v20 = vpop.trf.xlu1 }
 0x30e   : > { %650 = vmatmul.mubr.msk.f32.vlgmr.msra.gmra.mrb[0].mxu1 %vm286_vm0, %v394_v20 }
 0x3e1   : > { %v479_v21 = vpop.f32.mrb[0].mxu1 }
 0x3e2   : > { %493 = vst [vmem:[%s275_s24] sm:$0xff] %v479_v21  ;;  %v481_v22 = vpop.f32.mrb[1].mxu1 }
 0x3e3   : > { %494 = vst [vmem:[%s275_s24 + $0x8] sm:$0xff] %v481_v22 }
 0x3e4   : > { %840 = shalt.err (!%p837_p13)
}
 0x3e5   : > { %s841_s8 = scalar_lea.hbm %s1160_s5, 256  ;;  %s845_s7 = scalar_lea.hbm %s1210_s3, 512 }
 0x3e6   : > { %p842_p11 = scmp.ne.s32.totalorder %s1160_s5, %s841_s8  ;;  %p846_p5 = scmp.lt.u32.totalorder %s1160_s5, %s1210_s3 }
 0x3e7   : > { %p847_p3 = scmp.lt.u32.totalorder %s845_s7, %s841_s8  ;;  %p849_p0 = scmp.lt.u32.totalorder %s841_s8, %s1160_s5 }
 0x3e8   : > { %p843_p1 = pnand %p842_p11, %p1231_p6 }
 0x3e9   : > { %p848_p2 = por %p847_p3, %p846_p5 }
 0x3ea   : > { %p844_p7 = pneg %p843_p1 }
 0x3eb   : > { %p850_p12 = por %p849_p0, %p848_p2 }
 0x3ed   : > { %p851_p4 = pnand %p850_p12, %p844_p7 }
 0x3ef   : > { %854 = shalt.err (!%p851_p4)
}
 0x3f0   : > { %664 = dma.vmem_to_hbm [thread:$0]  (%p1231_p6), %s1155_s30, 256, %s1160_s5, %s496_s29  }
 0x3f1 PF: > { %s522_s1 = sand.u32 1, %s893_s12   ;;  %p1232_p8 = scmp.ne.s32.totalorder %s1223_s27, 0 }
 0x3f2   : > { %p1233_p9 = scmp.ge.s32.totalorder %s913_s17, 2  ;;  %s523_s4 = scalar_lea.sflag [#allocation5], %s522_s1 }
 0x3f4   : > { %p677_p10 = pnand %p1233_p9, %p1232_p8 }
 0x3f6   : > { %888 = dma.done.wait (!%p677_p10), %s523_s4, 256  }
 0x3f7   : > { %890 = vsyncadd (!%p677_p10), %s523_s4, 4294967040  ;;  %s22_s17 = sadd.s32 1, %s913_s17   ;;  %s1234_s25 = sld [smem:[#allocation15_spill]] }
 0x3f8   : > { %p19_p13 = scmp.ge.s32.totalorder %s22_s17, 4   ;;  %s1235_s15 = sld [smem:[#allocation13_spill]] }
 0x3f9   : > { %s1236_s16 = sld [smem:[#allocation14_spill]]  ;;  %s1237_s12 = smov %s897_s13 }
 0x3fa   : > { %s1238_s13 = smov %s901_s14  ;;  %21 = sbr.rel (!%p19_p13) target bundleno = 10 (0xa), region = 109 }
 0x3fd   : > { %s1239_s14 = smov %s1234_s25 }
 0x401   :  { %528 = vsyncpa [#allocation4], 1 }
 0x402   :  { %530 = vsyncpa [#allocation4 + $0x1], 1 }
 0x403   :  { %531 = vsyncpa [#allocation7], 1 }
 0x404   :  { %533 = vsyncpa [#allocation7 + $0x1], 1 }
 0x405   :  { %534 = vsyncpa [#allocation5], 1 }
 0x406   :  { %536 = vsyncpa [#allocation5 + $0x1], 1 }

</bundles_post_ra>
